<compile_context>
chip_gen: v5e
topology: v5e:2x2
jax: 0.10.0
libtpu: 0.0.40
codegen_flags: <defaults>
</compile_context>

<pallas_src>
import math

import jax
import jax.numpy as jnp
from jax.experimental import pallas as pl
from jax.experimental.pallas import tpu as pltpu


def _pos_embed_kernel(y_ref, x_ref, o_ref):
    # y_ref: (P, tH, 1) -- sin/cos table for the y (row) half of the channels
    # x_ref: (P, 1, W)  -- sin/cos table for the x (col) half of the channels
    # o_ref: (2P, tH, W) -- one NCHW block (batch dim squeezed by the BlockSpec)
    P, tH, _ = y_ref.shape
    W = x_ref.shape[-1]
    # Lane-broadcast of the y table (value per (channel, row), constant along columns).
    o_ref[0:P, :, :] = jnp.broadcast_to(y_ref[...], (P, tH, W)).astype(o_ref.dtype)
    # Sublane-broadcast of the x table (value per (channel, col), constant along rows).
    o_ref[P:2 * P, :, :] = jnp.broadcast_to(x_ref[...], (P, tH, W)).astype(o_ref.dtype)


def _choose_row_tile(H, max_rows):
    """Rows per output block. Must be a multiple of 8 (Mosaic sublane tiling) or equal H.
    Fits the per-block VMEM budget and, for larger maps, prefers an even number of grid
    steps >= 4 so v7x's two TensorCores each pipeline >= 2 blocks (no-op on v5e/v6e)."""
    if H <= max(8, min(32, max_rows)):
        return H                                   # small map: single full-extent block
    max_rows = max(8, (max_rows // 8) * 8)
    th = min(max_rows, max(8, (((H + 3) // 4) + 7) // 8 * 8))
    steps = -(-H // th)
    if steps > 1 and steps % 2 == 1 and th > 8:
        th_even = max(8, ((-(-H // (steps + 1))) + 7) // 8 * 8)
        if th_even <= max_rows and (-(-H // th_even)) % 2 == 0:
            th = th_even
    return th


def position_embedding_sine(features, num_pos_feats=64, temperature=10000,
                            normalize=False, scale=None, out_dtype=jnp.float32):
    if scale is not None and normalize is False:
        raise ValueError("normalize should be True if scale is passed")
    if scale is None:
        scale = 2 * math.pi

    B, _C, H, W = features.shape
    P = num_pos_feats
    C2 = 2 * P

    # ---- tiny separable trig tables (exact reference math; O(P*(H+W)) elements) ----
    dim_t = jnp.arange(P, dtype=jnp.float32)
    dim_t = temperature ** (2 * (dim_t // 2) / P)                        # (P,)
    is_sin = (jnp.arange(P) % 2 == 0)[:, None]                           # even k -> sin

    y = jnp.arange(H, dtype=jnp.float32) + 1.0                           # cumsum of ones
    x = jnp.arange(W, dtype=jnp.float32) + 1.0
    if normalize:
        eps = 1e-6
        y = (y - 0.5) / (float(H) + eps) * scale                         # y[-1] == H
        x = (x - 0.5) / (float(W) + eps) * scale
    ay = y[None, :] / dim_t[:, None]                                     # (P, H)
    ax = x[None, :] / dim_t[:, None]                                     # (P, W)
    y_tab = jnp.where(is_sin, jnp.sin(ay), jnp.cos(ay))[:, :, None].astype(out_dtype)  # (P,H,1)
    x_tab = jnp.where(is_sin, jnp.sin(ax), jnp.cos(ax))[:, None, :].astype(out_dtype)  # (P,1,W)

    # ---- row tiling: ~6 MiB output block => ~12 MiB double-buffered (fits v5e default) ----
    itemsize = jnp.dtype(out_dtype).itemsize
    bytes_per_row = C2 * W * itemsize
    max_rows = max(1, (6 * 1024 * 1024) // bytes_per_row)
    tH = _choose_row_tile(H, max_rows)
    grid = (pl.cdiv(H, tH), B)     # rows outer (table block reused across inner batch loop)

    pos = pl.pallas_call(
        _pos_embed_kernel,
        out_shape=jax.ShapeDtypeStruct((B, C2, H, W), out_dtype),
        grid=grid,
        in_specs=[
            pl.BlockSpec((P, tH, 1), lambda i, b: (0, i, 0)),
            pl.BlockSpec((P, 1, W), lambda i, b: (0, 0, 0)),
        ],
        out_specs=pl.BlockSpec((None, C2, tH, W), lambda i, b: (b, 0, i, 0)),
        compiler_params=pltpu.CompilerParams(
            dimension_semantics=("parallel", "parallel")),
    )(y_tab, x_tab)
    return pos


def _reference(features, num_pos_feats=64, temperature=10000, normalize=False, scale=None):
    """Pure-JAX port of the PyTorch forward, for correctness checking."""
    if scale is None:
        scale = 2 * math.pi
    B, _C, H, W = features.shape
    ones = jnp.ones((B, H, W), dtype=jnp.float32)
    y_embed = jnp.cumsum(ones, axis=1)
    x_embed = jnp.cumsum(ones, axis=2)
    if normalize:
        eps = 1e-6
        y_embed = (y_embed - 0.5) / (y_embed[:, -1:, :] + eps) * scale
        x_embed = (x_embed - 0.5) / (x_embed[:, :, -1:] + eps) * scale
    dim_t = jnp.arange(num_pos_feats, dtype=jnp.float32)
    dim_t = temperature ** (2 * (dim_t // 2) / num_pos_feats)
    pos_x = x_embed[:, :, :, None] / dim_t
    pos_y = y_embed[:, :, :, None] / dim_t
    pos_x = jnp.stack((jnp.sin(pos_x[:, :, :, 0::2]), jnp.cos(pos_x[:, :, :, 1::2])),
                      axis=4).reshape(B, H, W, -1)
    pos_y = jnp.stack((jnp.sin(pos_y[:, :, :, 0::2]), jnp.cos(pos_y[:, :, :, 1::2])),
                      axis=4).reshape(B, H, W, -1)
    pos = jnp.concatenate((pos_y, pos_x), axis=3).transpose(0, 3, 1, 2)
    return pos


if __name__ == "__main__":
    key = jax.random.PRNGKey(0)
    B, C, H, W = 2, 4, 16, 16
    features = jax.random.normal(key, (B, C, H, W), dtype=jnp.float32)

    # normalize=False path
    pos = position_embedding_sine(features, num_pos_feats=64, temperature=10000,
                                  normalize=False)
    pos = jax.block_until_ready(pos)
    ref = _reference(features, num_pos_feats=64, temperature=10000, normalize=False)
    assert pos.shape == (B, 128, H, W), pos.shape
    assert jnp.allclose(pos, ref, atol=1e-5, rtol=1e-5), float(jnp.max(jnp.abs(pos - ref)))

    # normalize=True path
    pos_n = position_embedding_sine(features, num_pos_feats=64, temperature=10000,
                                    normalize=True)
    pos_n = jax.block_until_ready(pos_n)
    ref_n = _reference(features, num_pos_feats=64, temperature=10000, normalize=True)
    assert jnp.allclose(pos_n, ref_n, atol=1e-5, rtol=1e-5), \
        float(jnp.max(jnp.abs(pos_n - ref_n)))

    # multi-step grid, masked partial last row block, non-128 lane width
    B2, H2, W2 = 1, 40, 20
    feats2 = jax.random.normal(jax.random.PRNGKey(0), (B2, C, H2, W2), dtype=jnp.float32)
    pos2 = jax.block_until_ready(
        position_embedding_sine(feats2, num_pos_feats=64, temperature=10000, normalize=True))
    ref2 = _reference(feats2, num_pos_feats=64, temperature=10000, normalize=True)
    assert pos2.shape == (B2, 128, H2, W2), pos2.shape
    assert jnp.allclose(pos2, ref2, atol=1e-5, rtol=1e-5), \
        float(jnp.max(jnp.abs(pos2 - ref2)))

    print("KERNEL_OK")
</pallas_src>

<mosaic_0001>
module attributes {stable_mosaic.version = 11 : i64} {
  func.func @_pos_embed_kernel(%arg0: i32, %arg1: i32, %arg2: memref<64x16x1xf32, #tpu.memory_space<vmem>>, %arg3: memref<64x1x16xf32, #tpu.memory_space<vmem>>, %arg4: memref<1x128x16x16xf32, #tpu.memory_space<vmem>>) attributes {dimension_semantics = [#tpu.dimension_semantics<parallel>, #tpu.dimension_semantics<parallel>], iteration_bounds = array<i64: 1, 2>, scalar_prefetch = 0 : i64, scratch_operands = 0 : i64, tpu.core_type = #tpu.core_type<tc>, window_params = [{transform_indices = @transform_0, window_bounds = array<i64: 64, 16, 1>}, {pipeline_mode = #tpu.pipeline_mode<synchronous>, transform_indices = @transform_1, window_bounds = array<i64: 64, 1, 16>}, {transform_indices = @transform_2, window_bounds = array<i64: 1, 128, 16, 16>}]} {
    %c0 = arith.constant 0 : index
    %c0_0 = arith.constant 0 : index
    %c0_1 = arith.constant 0 : index
    %0 = vector.load %arg2[%c0, %c0_0, %c0_1] : memref<64x16x1xf32, #tpu.memory_space<vmem>>, vector<64x16x1xf32>
    %1 = vector.shape_cast %0 : vector<64x16x1xf32> to vector<64x16x1xf32>
    %2 = vector.broadcast %1 : vector<64x16x1xf32> to vector<64x16x16xf32>
    %c0_2 = arith.constant 0 : index
    %c0_3 = arith.constant 0 : index
    %c0_4 = arith.constant 0 : index
    %c0_5 = arith.constant 0 : index
    %3 = vector.load %arg4[%c0_2, %c0_3, %c0_4, %c0_5] : memref<1x128x16x16xf32, #tpu.memory_space<vmem>>, vector<1x64x16x16xf32>
    %4 = vector.shape_cast %3 : vector<1x64x16x16xf32> to vector<64x16x16xf32>
    %5 = vector.shape_cast %2 : vector<64x16x16xf32> to vector<1x64x16x16xf32>
    tpu.vector_store %arg4[%c0_2, %c0_3, %c0_4, %c0_5], %5 {strides = array<i32>} : memref<1x128x16x16xf32, #tpu.memory_space<vmem>>, vector<1x64x16x16xf32>,
    %c0_6 = arith.constant 0 : index
    %c0_7 = arith.constant 0 : index
    %c0_8 = arith.constant 0 : index
    %6 = vector.load %arg3[%c0_6, %c0_7, %c0_8] : memref<64x1x16xf32, #tpu.memory_space<vmem>>, vector<64x1x16xf32>
    %7 = vector.shape_cast %6 : vector<64x1x16xf32> to vector<64x1x16xf32>
    %8 = vector.broadcast %7 : vector<64x1x16xf32> to vector<64x16x16xf32>
    %c0_9 = arith.constant 0 : index
    %c64 = arith.constant 64 : index
    %c0_10 = arith.constant 0 : index
    %c0_11 = arith.constant 0 : index
    %9 = vector.load %arg4[%c0_9, %c64, %c0_10, %c0_11] : memref<1x128x16x16xf32, #tpu.memory_space<vmem>>, vector<1x64x16x16xf32>
    %10 = vector.shape_cast %9 : vector<1x64x16x16xf32> to vector<64x16x16xf32>
    %11 = vector.shape_cast %8 : vector<64x16x16xf32> to vector<1x64x16x16xf32>
    tpu.vector_store %arg4[%c0_9, %c64, %c0_10, %c0_11], %11 {strides = array<i32>} : memref<1x128x16x16xf32, #tpu.memory_space<vmem>>, vector<1x64x16x16xf32>,
    return
  }
  func.func @transform_0(%arg0: i32, %arg1: i32) -> (i32, i32, i32) {
    %c0_i32 = arith.constant 0 : i32
    %c0_i32_0 = arith.constant 0 : i32
    %c0_i32_1 = arith.constant 0 : i32
    return %c0_i32, %arg0, %c0_i32_0 : i32, i32, i32
  }
  func.func @transform_1(%arg0: i32, %arg1: i32) -> (i32, i32, i32) {
    %c0_i32 = arith.constant 0 : i32
    %c0_i32_0 = arith.constant 0 : i32
    %c0_i32_1 = arith.constant 0 : i32
    %c0_i32_2 = arith.constant 0 : i32
    return %c0_i32, %c0_i32_0, %c0_i32_1 : i32, i32, i32
  }
  func.func @transform_2(%arg0: i32, %arg1: i32) -> (i32, i32, i32, i32) {
    %c0_i32 = arith.constant 0 : i32
    %c0_i32_0 = arith.constant 0 : i32
    %c0_i32_1 = arith.constant 0 : i32
    return %arg1, %c0_i32, %arg0, %c0_i32_0 : i32, i32, i32, i32
  }
}

</mosaic_0001>

<bundles_post_ra>
// kernel: tpu_custom_call.1
= control target key start
LH: loop header
LB: loop body
LE: loop exit
PB: predicated region body
PF: predicated region fallthrough
CT: control target
= control target key end

     0   :  { %s1805_s9 = smov 0   ;;  %s1807_s10 = smov 0   ;;  %s2929_s0 = inlined_call_operand.vmem [shape: f32[64,16,1], index: 0, kind: input, shape index: {}]   ;;  %s2930_s1 = inlined_call_operand.vmem [shape: f32[64,1,16], index: 1, kind: input, shape index: {}]   ;;  %s2931_s2 = inlined_call_operand.vmem [shape: f32[2,128,16,16], index: 2, kind: output, shape index: {}]  }
   0x1   :  { %s1809_s11 = smov 0  }
   0x2 LB: > { %s21_s12 = sadd.s32 1, %s1783_s10  ;;  %p1539_p0 = scmp.ge.s32.totalorder %s1787_s11, 1  ;;  %s1787_s11 = sphi %s1809_s11, %s12_s11   ;;  %s1783_s10 = sphi %s1807_s10, %s2933_s10   ;;  %s1779_s9 = sphi %s1805_s9, %s2932_s9  }
   0x3   : > { %p22_p1 = scmp.ge.s32.totalorder %s21_s12, 2  ;;  %p127_p2 = scmp.lt.s32.totalorder %s1787_s11, 3 }
   0x5   : > { %s2935_s12 = smov (%p22_p1, %s21_s12), 0  ;;  %p128_p3 = pnand %p1539_p0, %p127_p2 }
   0x6   : > { %p160_p4 = scmp.lt.s32.totalorder (!%p128_p3), %s1779_s9, 1 }
   0x7   : > { %131 = sbr.rel (%p128_p3) target bundleno = 497 (0x1f1), region = 28 }
   0xc   : > { %v173_v0 = vld [vmem:[%s2929_s0 + $0x20] sm:$0xff]  ;;  %v171_v1 = vld [vmem:[%s2929_s0 + $0x10] sm:$0xff]  ;;  %v1789_v3 = vmov 0   ;;  %v174_v4 = vld [vmem:[%s2929_s0 + $0x28] sm:$0xff]  ;;  %s2937_s9 = smov (!%p160_p4, %s1779_s9), 1  ;;  %vm937_vm0 = vcmask 130048  }
   0xd   : > { %v169_v2 = vld [vmem:[%s2929_s0] sm:$0xff]  ;;  %1700 = vset.pattern.permute.xlu2 %v1789_v3  ;;  %1699 = vset.pattern.permute.xlu1 %v1789_v3  ;;  %v172_v5 = vld [vmem:[%s2929_s0 + $0x18] sm:$0xff]  ;;  %v170_v6 = vld [vmem:[%s2929_s0 + $0x8] sm:$0xff]  ;;  %s1672_s13 = sshll.u32 %s2937_s9, 11 }
   0xe   : > { %1698 = vset.pattern.permute.xlu0 %v1789_v3  ;;  %319 = vperm.xlu2 %1700, %v173_v0   ;;  %v177_v7 = vld [vmem:[%s2929_s0 + $0x40] sm:$0xff]  ;;  %v176_v8 = vld [vmem:[%s2929_s0 + $0x38] sm:$0xff]  ;;  %v175_v9 = vld [vmem:[%s2929_s0 + $0x30] sm:$0xff]  ;;  %s1938_s16 = scalar_lea.vmem %s2931_s2, %s1672_s13 }
   0xf   : > { %309 = vperm.xlu1 %1699, %v171_v1   ;;  %299 = vperm.xlu0 %1698, %v169_v2   ;;  %v180_v10 = vld [vmem:[%s2929_s0 + $0x58] sm:$0xff]  ;;  %v179_v11 = vld [vmem:[%s2929_s0 + $0x50] sm:$0xff]  ;;  %v178_v12 = vld [vmem:[%s2929_s0 + $0x48] sm:$0xff] }
  0x10   : > { %v183_v13 = vld [vmem:[%s2929_s0 + $0x70] sm:$0xff]  ;;  %v182_v14 = vld [vmem:[%s2929_s0 + $0x68] sm:$0xff]  ;;  %v181_v15 = vld [vmem:[%s2929_s0 + $0x60] sm:$0xff] }
  0x11   : > { %v186_v16 = vld [vmem:[%s2929_s0 + $0x88] sm:$0xff]  ;;  %v185_v17 = vld [vmem:[%s2929_s0 + $0x80] sm:$0xff]  ;;  %v184_v18 = vld [vmem:[%s2929_s0 + $0x78] sm:$0xff] }
  0x12   : > { %v189_v19 = vld [vmem:[%s2929_s0 + $0xa0] sm:$0xff]  ;;  %v188_v20 = vld [vmem:[%s2929_s0 + $0x98] sm:$0xff]  ;;  %v187_v21 = vld [vmem:[%s2929_s0 + $0x90] sm:$0xff] }
  0x13   : > { %v192_v22 = vld [vmem:[%s2929_s0 + $0xb8] sm:$0xff]  ;;  %v191_v23 = vld [vmem:[%s2929_s0 + $0xb0] sm:$0xff]  ;;  %v190_v24 = vld [vmem:[%s2929_s0 + $0xa8] sm:$0xff] }
  0x14   : > { %v195_v25 = vld [vmem:[%s2929_s0 + $0xd0] sm:$0xff]  ;;  %v194_v26 = vld [vmem:[%s2929_s0 + $0xc8] sm:$0xff]  ;;  %v193_v27 = vld [vmem:[%s2929_s0 + $0xc0] sm:$0xff] }
  0x15   : > { %v198_v28 = vld [vmem:[%s2929_s0 + $0xe8] sm:$0xff]  ;;  %v197_v29 = vld [vmem:[%s2929_s0 + $0xe0] sm:$0xff]  ;;  %v196_v30 = vld [vmem:[%s2929_s0 + $0xd8] sm:$0xff] }
  0x16   : > { %324 = vperm.xlu2 %1700, %v174_v4   ;;  %v201_v31 = vld [vmem:[%s2929_s0 + $0x100] sm:$0xff]  ;;  %v200_v32 = vld [vmem:[%s2929_s0 + $0xf8] sm:$0xff]  ;;  %v199_v33 = vld [vmem:[%s2929_s0 + $0xf0] sm:$0xff] }
  0x17   : > { %314 = vperm.xlu1 %1699, %v172_v5   ;;  %304 = vperm.xlu0 %1698, %v170_v6   ;;  %v204_v34 = vld [vmem:[%s2929_s0 + $0x118] sm:$0xff]  ;;  %v203_v35 = vld [vmem:[%s2929_s0 + $0x110] sm:$0xff]  ;;  %v202_v36 = vld [vmem:[%s2929_s0 + $0x108] sm:$0xff] }
  0x18   : > { %v207_v38 = vld [vmem:[%s2929_s0 + $0x130] sm:$0xff]  ;;  %v206_v39 = vld [vmem:[%s2929_s0 + $0x128] sm:$0xff]  ;;  %v205_v40 = vld [vmem:[%s2929_s0 + $0x120] sm:$0xff] }
  0x19   : > { %v210_v42 = vld [vmem:[%s2929_s0 + $0x148] sm:$0xff]  ;;  %v209_v43 = vld [vmem:[%s2929_s0 + $0x140] sm:$0xff]  ;;  %v208_v44 = vld [vmem:[%s2929_s0 + $0x138] sm:$0xff] }
  0x1a   : > { %v213_v46 = vld [vmem:[%s2929_s0 + $0x160] sm:$0xff]  ;;  %v212_v47 = vld [vmem:[%s2929_s0 + $0x158] sm:$0xff]  ;;  %v211_v48 = vld [vmem:[%s2929_s0 + $0x150] sm:$0xff] }
  0x1b   : > { %v216_v52 = vld [vmem:[%s2929_s0 + $0x178] sm:$0xff]  ;;  %v215_v53 = vld [vmem:[%s2929_s0 + $0x170] sm:$0xff]  ;;  %v214_v54 = vld [vmem:[%s2929_s0 + $0x168] sm:$0xff] }
  0x1c   : > { %v219_v58 = vld [vmem:[%s2929_s0 + $0x190] sm:$0xff]  ;;  %v218_v59 = vld [vmem:[%s2929_s0 + $0x188] sm:$0xff]  ;;  %v217_v60 = vld [vmem:[%s2929_s0 + $0x180] sm:$0xff] }
  0x1d   : > { %v222_v0 = vld [vmem:[%s2929_s0 + $0x1a8] sm:$0xff]  ;;  %v221_v1 = vld [vmem:[%s2929_s0 + $0x1a0] sm:$0xff]  ;;  %v220_v2 = vld [vmem:[%s2929_s0 + $0x198] sm:$0xff] }
  0x1e   : > { %339 = vperm.xlu2 %1700, %v177_v7   ;;  %v225_v6 = vld [vmem:[%s2929_s0 + $0x1c0] sm:$0xff]  ;;  %v224_v7 = vld [vmem:[%s2929_s0 + $0x1b8] sm:$0xff] }
  0x1f   : > { %334 = vperm.xlu1 %1699, %v176_v8   ;;  %329 = vperm.xlu0 %1698, %v175_v9   ;;  %v223_v8 = vld [vmem:[%s2929_s0 + $0x1b0] sm:$0xff] }
  0x26   : > { %354 = vperm.xlu2 %1700, %v180_v10  }
  0x27   : > { %349 = vperm.xlu1 %1699, %v179_v11   ;;  %344 = vperm.xlu0 %1698, %v178_v12   ;;  %v228_v12 = vld [vmem:[%s2929_s0 + $0x1d8] sm:$0xff] }
  0x2e   : > { %369 = vperm.xlu2 %1700, %v183_v13   ;;  %v227_v13 = vld [vmem:[%s2929_s0 + $0x1d0] sm:$0xff] }
  0x2f   : > { %364 = vperm.xlu1 %1699, %v182_v14   ;;  %359 = vperm.xlu0 %1698, %v181_v15   ;;  %v226_v14 = vld [vmem:[%s2929_s0 + $0x1c8] sm:$0xff] }
  0x36   : > { %384 = vperm.xlu2 %1700, %v186_v16  }
  0x37   : > { %379 = vperm.xlu1 %1699, %v185_v17   ;;  %374 = vperm.xlu0 %1698, %v184_v18   ;;  %v231_v18 = vld [vmem:[%s2929_s0 + $0x1f0] sm:$0xff] }
  0x3e   : > { %399 = vperm.xlu2 %1700, %v189_v19   ;;  %v230_v19 = vld [vmem:[%s2929_s0 + $0x1e8] sm:$0xff] }
  0x3f   : > { %394 = vperm.xlu1 %1699, %v188_v20   ;;  %389 = vperm.xlu0 %1698, %v187_v21   ;;  %v229_v20 = vld [vmem:[%s2929_s0 + $0x1e0] sm:$0xff] }
  0x46   : > { %414 = vperm.xlu2 %1700, %v192_v22  }
  0x47   : > { %409 = vperm.xlu1 %1699, %v191_v23   ;;  %404 = vperm.xlu0 %1698, %v190_v24   ;;  %v234_v24 = vld [vmem:[%s2929_s0 + $0x208] sm:$0xff] }
  0x4e   : > { %429 = vperm.xlu2 %1700, %v195_v25   ;;  %v233_v25 = vld [vmem:[%s2929_s0 + $0x200] sm:$0xff] }
  0x4f   : > { %424 = vperm.xlu1 %1699, %v194_v26   ;;  %419 = vperm.xlu0 %1698, %v193_v27   ;;  %v232_v26 = vld [vmem:[%s2929_s0 + $0x1f8] sm:$0xff] }
  0x56   : > { %444 = vperm.xlu2 %1700, %v198_v28  }
  0x57   : > { %439 = vperm.xlu1 %1699, %v197_v29   ;;  %434 = vperm.xlu0 %1698, %v196_v30   ;;  %v237_v30 = vld [vmem:[%s2929_s0 + $0x220] sm:$0xff] }
  0x5e   : > { %459 = vperm.xlu2 %1700, %v201_v31   ;;  %v236_v31 = vld [vmem:[%s2929_s0 + $0x218] sm:$0xff] }
  0x5f   : > { %454 = vperm.xlu1 %1699, %v200_v32   ;;  %449 = vperm.xlu0 %1698, %v199_v33   ;;  %v235_v32 = vld [vmem:[%s2929_s0 + $0x210] sm:$0xff] }
  0x66   : > { %474 = vperm.xlu2 %1700, %v204_v34  }
  0x67   : > { %469 = vperm.xlu1 %1699, %v203_v35   ;;  %464 = vperm.xlu0 %1698, %v202_v36   ;;  %v240_v36 = vld [vmem:[%s2929_s0 + $0x238] sm:$0xff] }
  0x68   : > { %v320_v37 = vpop.permute.xlu2 %319 }
  0x69   : > { %942 = vst.msk [vmem:[%s1938_s16 + $0x20] sm:$0xff] %vm937_vm0, %v320_v37  ;;  %v239_v37 = vld [vmem:[%s2929_s0 + $0x230] sm:$0xff] }
  0x6e   : > { %489 = vperm.xlu2 %1700, %v207_v38   ;;  %v238_v38 = vld [vmem:[%s2929_s0 + $0x228] sm:$0xff] }
  0x6f   : > { %484 = vperm.xlu1 %1699, %v206_v39   ;;  %479 = vperm.xlu0 %1698, %v205_v40  }
  0x70   : > { %v325_v41 = vpop.permute.xlu2 %324 }
  0x71   : > { %943 = vst.msk [vmem:[%s1938_s16 + $0x28] sm:$0xff] %vm937_vm0, %v325_v41 }
  0x76   : > { %504 = vperm.xlu2 %1700, %v210_v42   ;;  %v243_v42 = vld [vmem:[%s2929_s0 + $0x250] sm:$0xff] }
  0x77   : > { %499 = vperm.xlu1 %1699, %v209_v43   ;;  %494 = vperm.xlu0 %1698, %v208_v44   ;;  %v242_v43 = vld [vmem:[%s2929_s0 + $0x248] sm:$0xff]  ;;  %v241_v44 = vld [vmem:[%s2929_s0 + $0x240] sm:$0xff] }
  0x78   : > { %v340_v45 = vpop.permute.xlu2 %339 }
  0x79   : > { %946 = vst.msk [vmem:[%s1938_s16 + $0x40] sm:$0xff] %vm937_vm0, %v340_v45 }
  0x7e   : > { %519 = vperm.xlu2 %1700, %v213_v46  }
  0x7f   : > { %514 = vperm.xlu1 %1699, %v212_v47   ;;  %509 = vperm.xlu0 %1698, %v211_v48   ;;  %v246_v48 = vld [vmem:[%s2929_s0 + $0x268] sm:$0xff] }
  0x80   : > { %v355_v49 = vpop.permute.xlu2 %354 }
  0x81   : > { %949 = vst.msk [vmem:[%s1938_s16 + $0x58] sm:$0xff] %vm937_vm0, %v355_v49  ;;  %v310_v50 = vpop.permute.xlu1 %309  ;;  %v300_v51 = vpop.permute.xlu0 %299  ;;  %v245_v49 = vld [vmem:[%s2929_s0 + $0x260] sm:$0xff] }
  0x82   : > { %940 = vst.msk [vmem:[%s1938_s16 + $0x10] sm:$0xff] %vm937_vm0, %v310_v50  ;;  %v244_v50 = vld [vmem:[%s2929_s0 + $0x258] sm:$0xff] }
  0x83   : > { %938 = vst.msk [vmem:[%s1938_s16] sm:$0xff] %vm937_vm0, %v300_v51 }
  0x86   : > { %534 = vperm.xlu2 %1700, %v216_v52  }
  0x87   : > { %529 = vperm.xlu1 %1699, %v215_v53   ;;  %524 = vperm.xlu0 %1698, %v214_v54   ;;  %v249_v54 = vld [vmem:[%s2929_s0 + $0x280] sm:$0xff] }
  0x88   : > { %v370_v55 = vpop.permute.xlu2 %369 }
  0x89   : > { %952 = vst.msk [vmem:[%s1938_s16 + $0x70] sm:$0xff] %vm937_vm0, %v370_v55  ;;  %v315_v56 = vpop.permute.xlu1 %314  ;;  %v305_v57 = vpop.permute.xlu0 %304  ;;  %v248_v55 = vld [vmem:[%s2929_s0 + $0x278] sm:$0xff] }
  0x8a   : > { %941 = vst.msk [vmem:[%s1938_s16 + $0x18] sm:$0xff] %vm937_vm0, %v315_v56  ;;  %v247_v56 = vld [vmem:[%s2929_s0 + $0x270] sm:$0xff] }
  0x8b   : > { %939 = vst.msk [vmem:[%s1938_s16 + $0x8] sm:$0xff] %vm937_vm0, %v305_v57 }
  0x8e   : > { %549 = vperm.xlu2 %1700, %v219_v58  }
  0x8f   : > { %544 = vperm.xlu1 %1699, %v218_v59   ;;  %539 = vperm.xlu0 %1698, %v217_v60   ;;  %v252_v60 = vld [vmem:[%s2929_s0 + $0x298] sm:$0xff] }
  0x90   : > { %v385_v61 = vpop.permute.xlu2 %384 }
  0x91   : > { %955 = vst.msk [vmem:[%s1938_s16 + $0x88] sm:$0xff] %vm937_vm0, %v385_v61  ;;  %v335_v62 = vpop.permute.xlu1 %334  ;;  %v330_v63 = vpop.permute.xlu0 %329  ;;  %v251_v61 = vld [vmem:[%s2929_s0 + $0x290] sm:$0xff] }
  0x92   : > { %945 = vst.msk [vmem:[%s1938_s16 + $0x38] sm:$0xff] %vm937_vm0, %v335_v62  ;;  %v250_v62 = vld [vmem:[%s2929_s0 + $0x288] sm:$0xff] }
  0x93   : > { %944 = vst.msk [vmem:[%s1938_s16 + $0x30] sm:$0xff] %vm937_vm0, %v330_v63 }
  0x96   : > { %564 = vperm.xlu2 %1700, %v222_v0  }
  0x97   : > { %559 = vperm.xlu1 %1699, %v221_v1   ;;  %554 = vperm.xlu0 %1698, %v220_v2   ;;  %v255_v2 = vld [vmem:[%s2929_s0 + $0x2b0] sm:$0xff] }
  0x98   : > { %v400_v3 = vpop.permute.xlu2 %399 }
  0x99   : > { %958 = vst.msk [vmem:[%s1938_s16 + $0xa0] sm:$0xff] %vm937_vm0, %v400_v3  ;;  %v350_v4 = vpop.permute.xlu1 %349  ;;  %v345_v5 = vpop.permute.xlu0 %344  ;;  %v254_v3 = vld [vmem:[%s2929_s0 + $0x2a8] sm:$0xff] }
  0x9a   : > { %948 = vst.msk [vmem:[%s1938_s16 + $0x50] sm:$0xff] %vm937_vm0, %v350_v4  ;;  %v253_v4 = vld [vmem:[%s2929_s0 + $0x2a0] sm:$0xff] }
  0x9b   : > { %947 = vst.msk [vmem:[%s1938_s16 + $0x48] sm:$0xff] %vm937_vm0, %v345_v5 }
  0x9e   : > { %579 = vperm.xlu2 %1700, %v225_v6  }
  0x9f   : > { %574 = vperm.xlu1 %1699, %v224_v7   ;;  %569 = vperm.xlu0 %1698, %v223_v8   ;;  %v258_v8 = vld [vmem:[%s2929_s0 + $0x2c8] sm:$0xff] }
  0xa0   : > { %v415_v9 = vpop.permute.xlu2 %414 }
  0xa1   : > { %961 = vst.msk [vmem:[%s1938_s16 + $0xb8] sm:$0xff] %vm937_vm0, %v415_v9  ;;  %v365_v10 = vpop.permute.xlu1 %364  ;;  %v360_v11 = vpop.permute.xlu0 %359  ;;  %v257_v9 = vld [vmem:[%s2929_s0 + $0x2c0] sm:$0xff] }
  0xa2   : > { %951 = vst.msk [vmem:[%s1938_s16 + $0x68] sm:$0xff] %vm937_vm0, %v365_v10  ;;  %v256_v10 = vld [vmem:[%s2929_s0 + $0x2b8] sm:$0xff] }
  0xa3   : > { %950 = vst.msk [vmem:[%s1938_s16 + $0x60] sm:$0xff] %vm937_vm0, %v360_v11 }
  0xa6   : > { %594 = vperm.xlu2 %1700, %v228_v12  }
  0xa7   : > { %589 = vperm.xlu1 %1699, %v227_v13   ;;  %584 = vperm.xlu0 %1698, %v226_v14   ;;  %v261_v14 = vld [vmem:[%s2929_s0 + $0x2e0] sm:$0xff] }
  0xa8   : > { %v430_v15 = vpop.permute.xlu2 %429 }
  0xa9   : > { %964 = vst.msk [vmem:[%s1938_s16 + $0xd0] sm:$0xff] %vm937_vm0, %v430_v15  ;;  %v380_v16 = vpop.permute.xlu1 %379  ;;  %v375_v17 = vpop.permute.xlu0 %374  ;;  %v260_v15 = vld [vmem:[%s2929_s0 + $0x2d8] sm:$0xff] }
  0xaa   : > { %954 = vst.msk [vmem:[%s1938_s16 + $0x80] sm:$0xff] %vm937_vm0, %v380_v16  ;;  %v259_v16 = vld [vmem:[%s2929_s0 + $0x2d0] sm:$0xff] }
  0xab   : > { %953 = vst.msk [vmem:[%s1938_s16 + $0x78] sm:$0xff] %vm937_vm0, %v375_v17 }
  0xae   : > { %609 = vperm.xlu2 %1700, %v231_v18  }
  0xaf   : > { %604 = vperm.xlu1 %1699, %v230_v19   ;;  %599 = vperm.xlu0 %1698, %v229_v20   ;;  %v264_v20 = vld [vmem:[%s2929_s0 + $0x2f8] sm:$0xff] }
  0xb0   : > { %v445_v21 = vpop.permute.xlu2 %444 }
  0xb1   : > { %967 = vst.msk [vmem:[%s1938_s16 + $0xe8] sm:$0xff] %vm937_vm0, %v445_v21  ;;  %v395_v22 = vpop.permute.xlu1 %394  ;;  %v390_v23 = vpop.permute.xlu0 %389  ;;  %v263_v21 = vld [vmem:[%s2929_s0 + $0x2f0] sm:$0xff] }
  0xb2   : > { %957 = vst.msk [vmem:[%s1938_s16 + $0x98] sm:$0xff] %vm937_vm0, %v395_v22  ;;  %v262_v22 = vld [vmem:[%s2929_s0 + $0x2e8] sm:$0xff] }
  0xb3   : > { %956 = vst.msk [vmem:[%s1938_s16 + $0x90] sm:$0xff] %vm937_vm0, %v390_v23 }
  0xb6   : > { %624 = vperm.xlu2 %1700, %v234_v24  }
  0xb7   : > { %619 = vperm.xlu1 %1699, %v233_v25   ;;  %614 = vperm.xlu0 %1698, %v232_v26   ;;  %v267_v26 = vld [vmem:[%s2929_s0 + $0x310] sm:$0xff] }
  0xb8   : > { %v460_v27 = vpop.permute.xlu2 %459 }
  0xb9   : > { %970 = vst.msk [vmem:[%s1938_s16 + $0x100] sm:$0xff] %vm937_vm0, %v460_v27  ;;  %v410_v28 = vpop.permute.xlu1 %409  ;;  %v405_v29 = vpop.permute.xlu0 %404  ;;  %v266_v27 = vld [vmem:[%s2929_s0 + $0x308] sm:$0xff] }
  0xba   : > { %960 = vst.msk [vmem:[%s1938_s16 + $0xb0] sm:$0xff] %vm937_vm0, %v410_v28  ;;  %v265_v28 = vld [vmem:[%s2929_s0 + $0x300] sm:$0xff] }
  0xbb   : > { %959 = vst.msk [vmem:[%s1938_s16 + $0xa8] sm:$0xff] %vm937_vm0, %v405_v29 }
  0xbe   : > { %639 = vperm.xlu2 %1700, %v237_v30  }
  0xbf   : > { %634 = vperm.xlu1 %1699, %v236_v31   ;;  %629 = vperm.xlu0 %1698, %v235_v32   ;;  %v270_v32 = vld [vmem:[%s2929_s0 + $0x328] sm:$0xff] }
  0xc0   : > { %v475_v33 = vpop.permute.xlu2 %474 }
  0xc1   : > { %973 = vst.msk [vmem:[%s1938_s16 + $0x118] sm:$0xff] %vm937_vm0, %v475_v33  ;;  %v425_v34 = vpop.permute.xlu1 %424  ;;  %v420_v35 = vpop.permute.xlu0 %419  ;;  %v269_v33 = vld [vmem:[%s2929_s0 + $0x320] sm:$0xff] }
  0xc2   : > { %963 = vst.msk [vmem:[%s1938_s16 + $0xc8] sm:$0xff] %vm937_vm0, %v425_v34  ;;  %v268_v34 = vld [vmem:[%s2929_s0 + $0x318] sm:$0xff] }
  0xc3   : > { %962 = vst.msk [vmem:[%s1938_s16 + $0xc0] sm:$0xff] %vm937_vm0, %v420_v35 }
  0xc6   : > { %654 = vperm.xlu2 %1700, %v240_v36  }
  0xc7   : > { %649 = vperm.xlu1 %1699, %v239_v37   ;;  %644 = vperm.xlu0 %1698, %v238_v38   ;;  %v273_v38 = vld [vmem:[%s2929_s0 + $0x340] sm:$0xff] }
  0xc8   : > { %v490_v39 = vpop.permute.xlu2 %489 }
  0xc9   : > { %976 = vst.msk [vmem:[%s1938_s16 + $0x130] sm:$0xff] %vm937_vm0, %v490_v39  ;;  %v440_v40 = vpop.permute.xlu1 %439  ;;  %v435_v41 = vpop.permute.xlu0 %434  ;;  %v272_v39 = vld [vmem:[%s2929_s0 + $0x338] sm:$0xff] }
  0xca   : > { %966 = vst.msk [vmem:[%s1938_s16 + $0xe0] sm:$0xff] %vm937_vm0, %v440_v40  ;;  %v271_v40 = vld [vmem:[%s2929_s0 + $0x330] sm:$0xff] }
  0xcb   : > { %965 = vst.msk [vmem:[%s1938_s16 + $0xd8] sm:$0xff] %vm937_vm0, %v435_v41 }
  0xce   : > { %669 = vperm.xlu2 %1700, %v243_v42  }
  0xcf   : > { %664 = vperm.xlu1 %1699, %v242_v43   ;;  %659 = vperm.xlu0 %1698, %v241_v44   ;;  %v276_v44 = vld [vmem:[%s2929_s0 + $0x358] sm:$0xff] }
  0xd0   : > { %v505_v45 = vpop.permute.xlu2 %504 }
  0xd1   : > { %979 = vst.msk [vmem:[%s1938_s16 + $0x148] sm:$0xff] %vm937_vm0, %v505_v45  ;;  %v455_v46 = vpop.permute.xlu1 %454  ;;  %v450_v47 = vpop.permute.xlu0 %449  ;;  %v275_v45 = vld [vmem:[%s2929_s0 + $0x350] sm:$0xff] }
  0xd2   : > { %969 = vst.msk [vmem:[%s1938_s16 + $0xf8] sm:$0xff] %vm937_vm0, %v455_v46  ;;  %v274_v46 = vld [vmem:[%s2929_s0 + $0x348] sm:$0xff] }
  0xd3   : > { %968 = vst.msk [vmem:[%s1938_s16 + $0xf0] sm:$0xff] %vm937_vm0, %v450_v47 }
  0xd6   : > { %684 = vperm.xlu2 %1700, %v246_v48  }
  0xd7   : > { %679 = vperm.xlu1 %1699, %v245_v49   ;;  %674 = vperm.xlu0 %1698, %v244_v50   ;;  %v279_v50 = vld [vmem:[%s2929_s0 + $0x370] sm:$0xff] }
  0xd8   : > { %v520_v51 = vpop.permute.xlu2 %519 }
  0xd9   : > { %982 = vst.msk [vmem:[%s1938_s16 + $0x160] sm:$0xff] %vm937_vm0, %v520_v51  ;;  %v470_v52 = vpop.permute.xlu1 %469  ;;  %v465_v53 = vpop.permute.xlu0 %464  ;;  %v278_v51 = vld [vmem:[%s2929_s0 + $0x368] sm:$0xff] }
  0xda   : > { %972 = vst.msk [vmem:[%s1938_s16 + $0x110] sm:$0xff] %vm937_vm0, %v470_v52  ;;  %v277_v52 = vld [vmem:[%s2929_s0 + $0x360] sm:$0xff] }
  0xdb   : > { %971 = vst.msk [vmem:[%s1938_s16 + $0x108] sm:$0xff] %vm937_vm0, %v465_v53 }
  0xde   : > { %699 = vperm.xlu2 %1700, %v249_v54  }
  0xdf   : > { %694 = vperm.xlu1 %1699, %v248_v55   ;;  %689 = vperm.xlu0 %1698, %v247_v56   ;;  %v282_v56 = vld [vmem:[%s2929_s0 + $0x388] sm:$0xff] }
  0xe0   : > { %v535_v57 = vpop.permute.xlu2 %534 }
  0xe1   : > { %985 = vst.msk [vmem:[%s1938_s16 + $0x178] sm:$0xff] %vm937_vm0, %v535_v57  ;;  %v485_v58 = vpop.permute.xlu1 %484  ;;  %v480_v59 = vpop.permute.xlu0 %479  ;;  %v281_v57 = vld [vmem:[%s2929_s0 + $0x380] sm:$0xff] }
  0xe2   : > { %975 = vst.msk [vmem:[%s1938_s16 + $0x128] sm:$0xff] %vm937_vm0, %v485_v58  ;;  %v280_v58 = vld [vmem:[%s2929_s0 + $0x378] sm:$0xff] }
  0xe3   : > { %974 = vst.msk [vmem:[%s1938_s16 + $0x120] sm:$0xff] %vm937_vm0, %v480_v59 }
  0xe6   : > { %714 = vperm.xlu2 %1700, %v252_v60  }
  0xe7   : > { %709 = vperm.xlu1 %1699, %v251_v61   ;;  %704 = vperm.xlu0 %1698, %v250_v62   ;;  %v285_v62 = vld [vmem:[%s2929_s0 + $0x3a0] sm:$0xff] }
  0xe8   : > { %v550_v63 = vpop.permute.xlu2 %549 }
  0xe9   : > { %988 = vst.msk [vmem:[%s1938_s16 + $0x190] sm:$0xff] %vm937_vm0, %v550_v63  ;;  %v500_v0 = vpop.permute.xlu1 %499  ;;  %v495_v1 = vpop.permute.xlu0 %494  ;;  %v284_v63 = vld [vmem:[%s2929_s0 + $0x398] sm:$0xff] }
  0xea   : > { %978 = vst.msk [vmem:[%s1938_s16 + $0x140] sm:$0xff] %vm937_vm0, %v500_v0  ;;  %v283_v0 = vld [vmem:[%s2929_s0 + $0x390] sm:$0xff] }
  0xeb   : > { %977 = vst.msk [vmem:[%s1938_s16 + $0x138] sm:$0xff] %vm937_vm0, %v495_v1 }
  0xee   : > { %729 = vperm.xlu2 %1700, %v255_v2  }
  0xef   : > { %724 = vperm.xlu1 %1699, %v254_v3   ;;  %719 = vperm.xlu0 %1698, %v253_v4   ;;  %v288_v4 = vld [vmem:[%s2929_s0 + $0x3b8] sm:$0xff] }
  0xf0   : > { %v565_v5 = vpop.permute.xlu2 %564 }
  0xf1   : > { %991 = vst.msk [vmem:[%s1938_s16 + $0x1a8] sm:$0xff] %vm937_vm0, %v565_v5  ;;  %v515_v6 = vpop.permute.xlu1 %514  ;;  %v510_v7 = vpop.permute.xlu0 %509  ;;  %v287_v5 = vld [vmem:[%s2929_s0 + $0x3b0] sm:$0xff] }
  0xf2   : > { %981 = vst.msk [vmem:[%s1938_s16 + $0x158] sm:$0xff] %vm937_vm0, %v515_v6  ;;  %v286_v6 = vld [vmem:[%s2929_s0 + $0x3a8] sm:$0xff] }
  0xf3   : > { %980 = vst.msk [vmem:[%s1938_s16 + $0x150] sm:$0xff] %vm937_vm0, %v510_v7 }
  0xf6   : > { %744 = vperm.xlu2 %1700, %v258_v8  }
  0xf7   : > { %739 = vperm.xlu1 %1699, %v257_v9   ;;  %734 = vperm.xlu0 %1698, %v256_v10   ;;  %v291_v10 = vld [vmem:[%s2929_s0 + $0x3d0] sm:$0xff] }
  0xf8   : > { %v580_v11 = vpop.permute.xlu2 %579 }
  0xf9   : > { %994 = vst.msk [vmem:[%s1938_s16 + $0x1c0] sm:$0xff] %vm937_vm0, %v580_v11  ;;  %v530_v12 = vpop.permute.xlu1 %529  ;;  %v525_v13 = vpop.permute.xlu0 %524  ;;  %v290_v11 = vld [vmem:[%s2929_s0 + $0x3c8] sm:$0xff] }
  0xfa   : > { %984 = vst.msk [vmem:[%s1938_s16 + $0x170] sm:$0xff] %vm937_vm0, %v530_v12  ;;  %v289_v12 = vld [vmem:[%s2929_s0 + $0x3c0] sm:$0xff] }
  0xfb   : > { %983 = vst.msk [vmem:[%s1938_s16 + $0x168] sm:$0xff] %vm937_vm0, %v525_v13 }
  0xfe   : > { %759 = vperm.xlu2 %1700, %v261_v14  }
  0xff   : > { %754 = vperm.xlu1 %1699, %v260_v15   ;;  %749 = vperm.xlu0 %1698, %v259_v16   ;;  %v294_v16 = vld [vmem:[%s2929_s0 + $0x3e8] sm:$0xff] }
 0x100   : > { %v595_v17 = vpop.permute.xlu2 %594 }
 0x101   : > { %997 = vst.msk [vmem:[%s1938_s16 + $0x1d8] sm:$0xff] %vm937_vm0, %v595_v17  ;;  %v545_v18 = vpop.permute.xlu1 %544  ;;  %v540_v19 = vpop.permute.xlu0 %539  ;;  %v293_v17 = vld [vmem:[%s2929_s0 + $0x3e0] sm:$0xff] }
 0x102   : > { %987 = vst.msk [vmem:[%s1938_s16 + $0x188] sm:$0xff] %vm937_vm0, %v545_v18  ;;  %v292_v18 = vld [vmem:[%s2929_s0 + $0x3d8] sm:$0xff] }
 0x103   : > { %986 = vst.msk [vmem:[%s1938_s16 + $0x180] sm:$0xff] %vm937_vm0, %v540_v19 }
 0x106   : > { %774 = vperm.xlu2 %1700, %v264_v20  }
 0x107   : > { %769 = vperm.xlu1 %1699, %v263_v21   ;;  %764 = vperm.xlu0 %1698, %v262_v22   ;;  %v296_v22 = vld [vmem:[%s2929_s0 + $0x3f8] sm:$0xff] }
 0x108   : > { %v610_v23 = vpop.permute.xlu2 %609 }
 0x109   : > { %1000 = vst.msk [vmem:[%s1938_s16 + $0x1f0] sm:$0xff] %vm937_vm0, %v610_v23  ;;  %v560_v24 = vpop.permute.xlu1 %559  ;;  %v555_v25 = vpop.permute.xlu0 %554  ;;  %v295_v23 = vld [vmem:[%s2929_s0 + $0x3f0] sm:$0xff] }
 0x10a   : > { %990 = vst.msk [vmem:[%s1938_s16 + $0x1a0] sm:$0xff] %vm937_vm0, %v560_v24 }
 0x10b   : > { %989 = vst.msk [vmem:[%s1938_s16 + $0x198] sm:$0xff] %vm937_vm0, %v555_v25 }
 0x10e   : > { %789 = vperm.xlu2 %1700, %v267_v26  }
 0x10f   : > { %784 = vperm.xlu1 %1699, %v266_v27   ;;  %779 = vperm.xlu0 %1698, %v265_v28  }
 0x110   : > { %v625_v29 = vpop.permute.xlu2 %624 }
 0x111   : > { %1003 = vst.msk [vmem:[%s1938_s16 + $0x208] sm:$0xff] %vm937_vm0, %v625_v29  ;;  %v575_v30 = vpop.permute.xlu1 %574  ;;  %v570_v31 = vpop.permute.xlu0 %569 }
 0x112   : > { %993 = vst.msk [vmem:[%s1938_s16 + $0x1b8] sm:$0xff] %vm937_vm0, %v575_v30 }
 0x113   : > { %992 = vst.msk [vmem:[%s1938_s16 + $0x1b0] sm:$0xff] %vm937_vm0, %v570_v31 }
 0x116   : > { %804 = vperm.xlu2 %1700, %v270_v32  }
 0x117   : > { %799 = vperm.xlu1 %1699, %v269_v33   ;;  %794 = vperm.xlu0 %1698, %v268_v34  }
 0x118   : > { %v640_v35 = vpop.permute.xlu2 %639 }
 0x119   : > { %1006 = vst.msk [vmem:[%s1938_s16 + $0x220] sm:$0xff] %vm937_vm0, %v640_v35  ;;  %v590_v36 = vpop.permute.xlu1 %589  ;;  %v585_v37 = vpop.permute.xlu0 %584 }
 0x11a   : > { %996 = vst.msk [vmem:[%s1938_s16 + $0x1d0] sm:$0xff] %vm937_vm0, %v590_v36 }
 0x11b   : > { %995 = vst.msk [vmem:[%s1938_s16 + $0x1c8] sm:$0xff] %vm937_vm0, %v585_v37 }
 0x11e   : > { %819 = vperm.xlu2 %1700, %v273_v38  }
 0x11f   : > { %814 = vperm.xlu1 %1699, %v272_v39   ;;  %809 = vperm.xlu0 %1698, %v271_v40  }
 0x120   : > { %v655_v41 = vpop.permute.xlu2 %654 }
 0x121   : > { %1009 = vst.msk [vmem:[%s1938_s16 + $0x238] sm:$0xff] %vm937_vm0, %v655_v41  ;;  %v605_v42 = vpop.permute.xlu1 %604  ;;  %v600_v43 = vpop.permute.xlu0 %599 }
 0x122   : > { %999 = vst.msk [vmem:[%s1938_s16 + $0x1e8] sm:$0xff] %vm937_vm0, %v605_v42 }
 0x123   : > { %998 = vst.msk [vmem:[%s1938_s16 + $0x1e0] sm:$0xff] %vm937_vm0, %v600_v43 }
 0x126   : > { %834 = vperm.xlu2 %1700, %v276_v44  }
 0x127   : > { %829 = vperm.xlu1 %1699, %v275_v45   ;;  %824 = vperm.xlu0 %1698, %v274_v46  }
 0x128   : > { %v670_v47 = vpop.permute.xlu2 %669 }
 0x129   : > { %1012 = vst.msk [vmem:[%s1938_s16 + $0x250] sm:$0xff] %vm937_vm0, %v670_v47  ;;  %v620_v48 = vpop.permute.xlu1 %619  ;;  %v615_v49 = vpop.permute.xlu0 %614 }
 0x12a   : > { %1002 = vst.msk [vmem:[%s1938_s16 + $0x200] sm:$0xff] %vm937_vm0, %v620_v48 }
 0x12b   : > { %1001 = vst.msk [vmem:[%s1938_s16 + $0x1f8] sm:$0xff] %vm937_vm0, %v615_v49 }
 0x12e   : > { %849 = vperm.xlu2 %1700, %v279_v50  }
 0x12f   : > { %844 = vperm.xlu1 %1699, %v278_v51   ;;  %839 = vperm.xlu0 %1698, %v277_v52  }
 0x130   : > { %v685_v53 = vpop.permute.xlu2 %684 }
 0x131   : > { %1015 = vst.msk [vmem:[%s1938_s16 + $0x268] sm:$0xff] %vm937_vm0, %v685_v53  ;;  %v635_v54 = vpop.permute.xlu1 %634  ;;  %v630_v55 = vpop.permute.xlu0 %629 }
 0x132   : > { %1005 = vst.msk [vmem:[%s1938_s16 + $0x218] sm:$0xff] %vm937_vm0, %v635_v54 }
 0x133   : > { %1004 = vst.msk [vmem:[%s1938_s16 + $0x210] sm:$0xff] %vm937_vm0, %v630_v55 }
 0x136   : > { %864 = vperm.xlu2 %1700, %v282_v56  }
 0x137   : > { %859 = vperm.xlu1 %1699, %v281_v57   ;;  %854 = vperm.xlu0 %1698, %v280_v58  }
 0x138   : > { %v700_v59 = vpop.permute.xlu2 %699 }
 0x139   : > { %1018 = vst.msk [vmem:[%s1938_s16 + $0x280] sm:$0xff] %vm937_vm0, %v700_v59  ;;  %v650_v60 = vpop.permute.xlu1 %649  ;;  %v645_v61 = vpop.permute.xlu0 %644 }
 0x13a   : > { %1008 = vst.msk [vmem:[%s1938_s16 + $0x230] sm:$0xff] %vm937_vm0, %v650_v60 }
 0x13b   : > { %1007 = vst.msk [vmem:[%s1938_s16 + $0x228] sm:$0xff] %vm937_vm0, %v645_v61  ;;  %v1701_v61 = vld [vmem:[%s2930_s1] ss:$0 sm:$0xff] }
 0x13c   : > { %1542 = vst.msk [vmem:[%s1938_s16 + $0x400] sm:$0xff] %vm937_vm0, %v1701_v61 }
 0x13d   : > { %1543 = vst.msk [vmem:[%s1938_s16 + $0x408] sm:$0xff] %vm937_vm0, %v1701_v61  ;;  %v1761_v61 = vld [vmem:[%s2930_s1 + $0x3c] ss:$0 sm:$0xff] }
 0x13e   : > { %879 = vperm.xlu2 %1700, %v285_v62   ;;  %v1702_v62 = vld [vmem:[%s2930_s1 + $0x1] ss:$0 sm:$0xff]  ;;  %1662 = vst.msk [vmem:[%s1938_s16 + $0x7c0] sm:$0xff] %vm937_vm0, %v1761_v61 }
 0x13f   : > { %874 = vperm.xlu1 %1699, %v284_v63   ;;  %869 = vperm.xlu0 %1698, %v283_v0   ;;  %1544 = vst.msk [vmem:[%s1938_s16 + $0x410] sm:$0xff] %vm937_vm0, %v1702_v62 }
 0x140   : > { %v715_v1 = vpop.permute.xlu2 %714  ;;  %1545 = vst.msk [vmem:[%s1938_s16 + $0x418] sm:$0xff] %vm937_vm0, %v1702_v62  ;;  %v1762_v62 = vld [vmem:[%s2930_s1 + $0x3d] ss:$0 sm:$0xff] }
 0x141   : > { %1021 = vst.msk [vmem:[%s1938_s16 + $0x298] sm:$0xff] %vm937_vm0, %v715_v1  ;;  %v665_v2 = vpop.permute.xlu1 %664  ;;  %v660_v3 = vpop.permute.xlu0 %659  ;;  %v1703_v1 = vld [vmem:[%s2930_s1 + $0x2] ss:$0 sm:$0xff] }
 0x142   : > { %1011 = vst.msk [vmem:[%s1938_s16 + $0x248] sm:$0xff] %vm937_vm0, %v665_v2  ;;  %v1704_v2 = vld [vmem:[%s2930_s1 + $0x3] ss:$0 sm:$0xff] }
 0x143   : > { %1010 = vst.msk [vmem:[%s1938_s16 + $0x240] sm:$0xff] %vm937_vm0, %v660_v3  ;;  %v1705_v3 = vld [vmem:[%s2930_s1 + $0x4] ss:$0 sm:$0xff] }
 0x144   : > { %1546 = vst.msk [vmem:[%s1938_s16 + $0x420] sm:$0xff] %vm937_vm0, %v1703_v1 }
 0x145   : > { %1547 = vst.msk [vmem:[%s1938_s16 + $0x428] sm:$0xff] %vm937_vm0, %v1703_v1 }
 0x146   : > { %894 = vperm.xlu2 %1700, %v288_v4   ;;  %1548 = vst.msk [vmem:[%s1938_s16 + $0x430] sm:$0xff] %vm937_vm0, %v1704_v2 }
 0x147   : > { %889 = vperm.xlu1 %1699, %v287_v5   ;;  %884 = vperm.xlu0 %1698, %v286_v6   ;;  %1549 = vst.msk [vmem:[%s1938_s16 + $0x438] sm:$0xff] %vm937_vm0, %v1704_v2  ;;  %v1706_v6 = vld [vmem:[%s2930_s1 + $0x5] ss:$0 sm:$0xff] }
 0x148   : > { %v730_v7 = vpop.permute.xlu2 %729  ;;  %1550 = vst.msk [vmem:[%s1938_s16 + $0x440] sm:$0xff] %vm937_vm0, %v1705_v3 }
 0x149   : > { %1024 = vst.msk [vmem:[%s1938_s16 + $0x2b0] sm:$0xff] %vm937_vm0, %v730_v7  ;;  %v680_v8 = vpop.permute.xlu1 %679  ;;  %v675_v9 = vpop.permute.xlu0 %674  ;;  %v1707_v7 = vld [vmem:[%s2930_s1 + $0x6] ss:$0 sm:$0xff] }
 0x14a   : > { %1014 = vst.msk [vmem:[%s1938_s16 + $0x260] sm:$0xff] %vm937_vm0, %v680_v8  ;;  %v1708_v8 = vld [vmem:[%s2930_s1 + $0x7] ss:$0 sm:$0xff] }
 0x14b   : > { %1013 = vst.msk [vmem:[%s1938_s16 + $0x258] sm:$0xff] %vm937_vm0, %v675_v9  ;;  %v1709_v9 = vld [vmem:[%s2930_s1 + $0x8] ss:$0 sm:$0xff] }
 0x14c   : > { %1551 = vst.msk [vmem:[%s1938_s16 + $0x448] sm:$0xff] %vm937_vm0, %v1705_v3 }
 0x14d   : > { %1552 = vst.msk [vmem:[%s1938_s16 + $0x450] sm:$0xff] %vm937_vm0, %v1706_v6 }
 0x14e   : > { %909 = vperm.xlu2 %1700, %v291_v10   ;;  %1553 = vst.msk [vmem:[%s1938_s16 + $0x458] sm:$0xff] %vm937_vm0, %v1706_v6  ;;  %v1710_v10 = vld [vmem:[%s2930_s1 + $0x9] ss:$0 sm:$0xff] }
 0x14f   : > { %904 = vperm.xlu1 %1699, %v290_v11   ;;  %899 = vperm.xlu0 %1698, %v289_v12   ;;  %1554 = vst.msk [vmem:[%s1938_s16 + $0x460] sm:$0xff] %vm937_vm0, %v1707_v7  ;;  %v1711_v11 = vld [vmem:[%s2930_s1 + $0xa] ss:$0 sm:$0xff]  ;;  %v1712_v12 = vld [vmem:[%s2930_s1 + $0xb] ss:$0 sm:$0xff] }
 0x150   : > { %v745_v13 = vpop.permute.xlu2 %744  ;;  %1555 = vst.msk [vmem:[%s1938_s16 + $0x468] sm:$0xff] %vm937_vm0, %v1707_v7 }
 0x151   : > { %1027 = vst.msk [vmem:[%s1938_s16 + $0x2c8] sm:$0xff] %vm937_vm0, %v745_v13  ;;  %v695_v14 = vpop.permute.xlu1 %694  ;;  %v690_v15 = vpop.permute.xlu0 %689  ;;  %v1713_v13 = vld [vmem:[%s2930_s1 + $0xc] ss:$0 sm:$0xff] }
 0x152   : > { %1017 = vst.msk [vmem:[%s1938_s16 + $0x278] sm:$0xff] %vm937_vm0, %v695_v14  ;;  %v1714_v14 = vld [vmem:[%s2930_s1 + $0xd] ss:$0 sm:$0xff] }
 0x153   : > { %1016 = vst.msk [vmem:[%s1938_s16 + $0x270] sm:$0xff] %vm937_vm0, %v690_v15  ;;  %v1715_v15 = vld [vmem:[%s2930_s1 + $0xe] ss:$0 sm:$0xff] }
 0x154   : > { %1556 = vst.msk [vmem:[%s1938_s16 + $0x470] sm:$0xff] %vm937_vm0, %v1708_v8 }
 0x155   : > { %1557 = vst.msk [vmem:[%s1938_s16 + $0x478] sm:$0xff] %vm937_vm0, %v1708_v8 }
 0x156   : > { %924 = vperm.xlu2 %1700, %v294_v16   ;;  %1558 = vst.msk [vmem:[%s1938_s16 + $0x480] sm:$0xff] %vm937_vm0, %v1709_v9  ;;  %v1716_v16 = vld [vmem:[%s2930_s1 + $0xf] ss:$0 sm:$0xff] }
 0x157   : > { %919 = vperm.xlu1 %1699, %v293_v17   ;;  %914 = vperm.xlu0 %1698, %v292_v18   ;;  %1559 = vst.msk [vmem:[%s1938_s16 + $0x488] sm:$0xff] %vm937_vm0, %v1709_v9  ;;  %v1717_v17 = vld [vmem:[%s2930_s1 + $0x10] ss:$0 sm:$0xff]  ;;  %v1718_v18 = vld [vmem:[%s2930_s1 + $0x11] ss:$0 sm:$0xff] }
 0x158   : > { %v760_v19 = vpop.permute.xlu2 %759  ;;  %1560 = vst.msk [vmem:[%s1938_s16 + $0x490] sm:$0xff] %vm937_vm0, %v1710_v10 }
 0x159   : > { %1030 = vst.msk [vmem:[%s1938_s16 + $0x2e0] sm:$0xff] %vm937_vm0, %v760_v19  ;;  %v710_v20 = vpop.permute.xlu1 %709  ;;  %v705_v21 = vpop.permute.xlu0 %704  ;;  %v1719_v19 = vld [vmem:[%s2930_s1 + $0x12] ss:$0 sm:$0xff] }
 0x15a   : > { %1020 = vst.msk [vmem:[%s1938_s16 + $0x290] sm:$0xff] %vm937_vm0, %v710_v20  ;;  %v1720_v20 = vld [vmem:[%s2930_s1 + $0x13] ss:$0 sm:$0xff] }
 0x15b   : > { %1019 = vst.msk [vmem:[%s1938_s16 + $0x288] sm:$0xff] %vm937_vm0, %v705_v21  ;;  %v1721_v21 = vld [vmem:[%s2930_s1 + $0x14] ss:$0 sm:$0xff] }
 0x15c   : > { %1561 = vst.msk [vmem:[%s1938_s16 + $0x498] sm:$0xff] %vm937_vm0, %v1710_v10 }
 0x15d   : > { %1562 = vst.msk [vmem:[%s1938_s16 + $0x4a0] sm:$0xff] %vm937_vm0, %v1711_v11 }
 0x15e   : > { %1563 = vst.msk [vmem:[%s1938_s16 + $0x4a8] sm:$0xff] %vm937_vm0, %v1711_v11 }
 0x15f   : > { %934 = vperm.xlu1 %1699, %v296_v22   ;;  %929 = vperm.xlu0 %1698, %v295_v23   ;;  %1564 = vst.msk [vmem:[%s1938_s16 + $0x4b0] sm:$0xff] %vm937_vm0, %v1712_v12  ;;  %v1722_v22 = vld [vmem:[%s2930_s1 + $0x15] ss:$0 sm:$0xff]  ;;  %v1723_v23 = vld [vmem:[%s2930_s1 + $0x16] ss:$0 sm:$0xff] }
 0x160   : > { %v775_v24 = vpop.permute.xlu2 %774  ;;  %1565 = vst.msk [vmem:[%s1938_s16 + $0x4b8] sm:$0xff] %vm937_vm0, %v1712_v12 }
 0x161   : > { %1033 = vst.msk [vmem:[%s1938_s16 + $0x2f8] sm:$0xff] %vm937_vm0, %v775_v24  ;;  %v725_v25 = vpop.permute.xlu1 %724  ;;  %v720_v26 = vpop.permute.xlu0 %719  ;;  %v1724_v24 = vld [vmem:[%s2930_s1 + $0x17] ss:$0 sm:$0xff] }
 0x162   : > { %1023 = vst.msk [vmem:[%s1938_s16 + $0x2a8] sm:$0xff] %vm937_vm0, %v725_v25  ;;  %v1725_v25 = vld [vmem:[%s2930_s1 + $0x18] ss:$0 sm:$0xff] }
 0x163   : > { %1022 = vst.msk [vmem:[%s1938_s16 + $0x2a0] sm:$0xff] %vm937_vm0, %v720_v26  ;;  %v1726_v26 = vld [vmem:[%s2930_s1 + $0x19] ss:$0 sm:$0xff] }
 0x164   : > { %1566 = vst.msk [vmem:[%s1938_s16 + $0x4c0] sm:$0xff] %vm937_vm0, %v1713_v13 }
 0x165   : > { %1567 = vst.msk [vmem:[%s1938_s16 + $0x4c8] sm:$0xff] %vm937_vm0, %v1713_v13 }
 0x166   : > { %1568 = vst.msk [vmem:[%s1938_s16 + $0x4d0] sm:$0xff] %vm937_vm0, %v1714_v14 }
 0x167   : > { %1569 = vst.msk [vmem:[%s1938_s16 + $0x4d8] sm:$0xff] %vm937_vm0, %v1714_v14 }
 0x168   : > { %v790_v27 = vpop.permute.xlu2 %789  ;;  %1570 = vst.msk [vmem:[%s1938_s16 + $0x4e0] sm:$0xff] %vm937_vm0, %v1715_v15 }
 0x169   : > { %1036 = vst.msk [vmem:[%s1938_s16 + $0x310] sm:$0xff] %vm937_vm0, %v790_v27  ;;  %v740_v28 = vpop.permute.xlu1 %739  ;;  %v735_v29 = vpop.permute.xlu0 %734  ;;  %v1727_v27 = vld [vmem:[%s2930_s1 + $0x1a] ss:$0 sm:$0xff] }
 0x16a   : > { %1026 = vst.msk [vmem:[%s1938_s16 + $0x2c0] sm:$0xff] %vm937_vm0, %v740_v28  ;;  %v1728_v28 = vld [vmem:[%s2930_s1 + $0x1b] ss:$0 sm:$0xff] }
 0x16b   : > { %1025 = vst.msk [vmem:[%s1938_s16 + $0x2b8] sm:$0xff] %vm937_vm0, %v735_v29  ;;  %v1729_v29 = vld [vmem:[%s2930_s1 + $0x1c] ss:$0 sm:$0xff] }
 0x16c   : > { %1571 = vst.msk [vmem:[%s1938_s16 + $0x4e8] sm:$0xff] %vm937_vm0, %v1715_v15 }
 0x16d   : > { %1572 = vst.msk [vmem:[%s1938_s16 + $0x4f0] sm:$0xff] %vm937_vm0, %v1716_v16 }
 0x16e   : > { %1573 = vst.msk [vmem:[%s1938_s16 + $0x4f8] sm:$0xff] %vm937_vm0, %v1716_v16 }
 0x16f   : > { %1574 = vst.msk [vmem:[%s1938_s16 + $0x500] sm:$0xff] %vm937_vm0, %v1717_v17 }
 0x170   : > { %v805_v30 = vpop.permute.xlu2 %804  ;;  %1575 = vst.msk [vmem:[%s1938_s16 + $0x508] sm:$0xff] %vm937_vm0, %v1717_v17 }
 0x171   : > { %1039 = vst.msk [vmem:[%s1938_s16 + $0x328] sm:$0xff] %vm937_vm0, %v805_v30  ;;  %v755_v31 = vpop.permute.xlu1 %754  ;;  %v750_v32 = vpop.permute.xlu0 %749  ;;  %v1730_v30 = vld [vmem:[%s2930_s1 + $0x1d] ss:$0 sm:$0xff] }
 0x172   : > { %1029 = vst.msk [vmem:[%s1938_s16 + $0x2d8] sm:$0xff] %vm937_vm0, %v755_v31  ;;  %v1731_v31 = vld [vmem:[%s2930_s1 + $0x1e] ss:$0 sm:$0xff] }
 0x173   : > { %1028 = vst.msk [vmem:[%s1938_s16 + $0x2d0] sm:$0xff] %vm937_vm0, %v750_v32  ;;  %v1732_v32 = vld [vmem:[%s2930_s1 + $0x1f] ss:$0 sm:$0xff] }
 0x174   : > { %1576 = vst.msk [vmem:[%s1938_s16 + $0x510] sm:$0xff] %vm937_vm0, %v1718_v18 }
 0x175   : > { %1577 = vst.msk [vmem:[%s1938_s16 + $0x518] sm:$0xff] %vm937_vm0, %v1718_v18 }
 0x176   : > { %1578 = vst.msk [vmem:[%s1938_s16 + $0x520] sm:$0xff] %vm937_vm0, %v1719_v19 }
 0x177   : > { %1579 = vst.msk [vmem:[%s1938_s16 + $0x528] sm:$0xff] %vm937_vm0, %v1719_v19 }
 0x178   : > { %v820_v33 = vpop.permute.xlu2 %819  ;;  %1580 = vst.msk [vmem:[%s1938_s16 + $0x530] sm:$0xff] %vm937_vm0, %v1720_v20 }
 0x179   : > { %1042 = vst.msk [vmem:[%s1938_s16 + $0x340] sm:$0xff] %vm937_vm0, %v820_v33  ;;  %v770_v34 = vpop.permute.xlu1 %769  ;;  %v765_v35 = vpop.permute.xlu0 %764  ;;  %v1733_v33 = vld [vmem:[%s2930_s1 + $0x20] ss:$0 sm:$0xff] }
 0x17a   : > { %1032 = vst.msk [vmem:[%s1938_s16 + $0x2f0] sm:$0xff] %vm937_vm0, %v770_v34  ;;  %v1734_v34 = vld [vmem:[%s2930_s1 + $0x21] ss:$0 sm:$0xff] }
 0x17b   : > { %1031 = vst.msk [vmem:[%s1938_s16 + $0x2e8] sm:$0xff] %vm937_vm0, %v765_v35  ;;  %v1735_v35 = vld [vmem:[%s2930_s1 + $0x22] ss:$0 sm:$0xff] }
 0x17c   : > { %1581 = vst.msk [vmem:[%s1938_s16 + $0x538] sm:$0xff] %vm937_vm0, %v1720_v20 }
 0x17d   : > { %1582 = vst.msk [vmem:[%s1938_s16 + $0x540] sm:$0xff] %vm937_vm0, %v1721_v21 }
 0x17e   : > { %1583 = vst.msk [vmem:[%s1938_s16 + $0x548] sm:$0xff] %vm937_vm0, %v1721_v21 }
 0x17f   : > { %1584 = vst.msk [vmem:[%s1938_s16 + $0x550] sm:$0xff] %vm937_vm0, %v1722_v22 }
 0x180   : > { %v835_v36 = vpop.permute.xlu2 %834  ;;  %1585 = vst.msk [vmem:[%s1938_s16 + $0x558] sm:$0xff] %vm937_vm0, %v1722_v22 }
 0x181   : > { %1045 = vst.msk [vmem:[%s1938_s16 + $0x358] sm:$0xff] %vm937_vm0, %v835_v36  ;;  %v785_v37 = vpop.permute.xlu1 %784  ;;  %v780_v38 = vpop.permute.xlu0 %779  ;;  %v1736_v36 = vld [vmem:[%s2930_s1 + $0x23] ss:$0 sm:$0xff] }
 0x182   : > { %1035 = vst.msk [vmem:[%s1938_s16 + $0x308] sm:$0xff] %vm937_vm0, %v785_v37  ;;  %v1737_v37 = vld [vmem:[%s2930_s1 + $0x24] ss:$0 sm:$0xff] }
 0x183   : > { %1034 = vst.msk [vmem:[%s1938_s16 + $0x300] sm:$0xff] %vm937_vm0, %v780_v38  ;;  %v1738_v38 = vld [vmem:[%s2930_s1 + $0x25] ss:$0 sm:$0xff] }
 0x184   : > { %1586 = vst.msk [vmem:[%s1938_s16 + $0x560] sm:$0xff] %vm937_vm0, %v1723_v23 }
 0x185   : > { %1587 = vst.msk [vmem:[%s1938_s16 + $0x568] sm:$0xff] %vm937_vm0, %v1723_v23 }
 0x186   : > { %1588 = vst.msk [vmem:[%s1938_s16 + $0x570] sm:$0xff] %vm937_vm0, %v1724_v24 }
 0x187   : > { %1589 = vst.msk [vmem:[%s1938_s16 + $0x578] sm:$0xff] %vm937_vm0, %v1724_v24 }
 0x188   : > { %v850_v39 = vpop.permute.xlu2 %849  ;;  %1590 = vst.msk [vmem:[%s1938_s16 + $0x580] sm:$0xff] %vm937_vm0, %v1725_v25 }
 0x189   : > { %1048 = vst.msk [vmem:[%s1938_s16 + $0x370] sm:$0xff] %vm937_vm0, %v850_v39  ;;  %v800_v40 = vpop.permute.xlu1 %799  ;;  %v795_v41 = vpop.permute.xlu0 %794  ;;  %v1739_v39 = vld [vmem:[%s2930_s1 + $0x26] ss:$0 sm:$0xff] }
 0x18a   : > { %1038 = vst.msk [vmem:[%s1938_s16 + $0x320] sm:$0xff] %vm937_vm0, %v800_v40  ;;  %v1740_v40 = vld [vmem:[%s2930_s1 + $0x27] ss:$0 sm:$0xff] }
 0x18b   : > { %1037 = vst.msk [vmem:[%s1938_s16 + $0x318] sm:$0xff] %vm937_vm0, %v795_v41  ;;  %v1741_v41 = vld [vmem:[%s2930_s1 + $0x28] ss:$0 sm:$0xff] }
 0x18c   : > { %1591 = vst.msk [vmem:[%s1938_s16 + $0x588] sm:$0xff] %vm937_vm0, %v1725_v25 }
 0x18d   : > { %1592 = vst.msk [vmem:[%s1938_s16 + $0x590] sm:$0xff] %vm937_vm0, %v1726_v26 }
 0x18e   : > { %1593 = vst.msk [vmem:[%s1938_s16 + $0x598] sm:$0xff] %vm937_vm0, %v1726_v26 }
 0x18f   : > { %1594 = vst.msk [vmem:[%s1938_s16 + $0x5a0] sm:$0xff] %vm937_vm0, %v1727_v27 }
 0x190   : > { %v865_v42 = vpop.permute.xlu2 %864  ;;  %1595 = vst.msk [vmem:[%s1938_s16 + $0x5a8] sm:$0xff] %vm937_vm0, %v1727_v27 }
 0x191   : > { %1051 = vst.msk [vmem:[%s1938_s16 + $0x388] sm:$0xff] %vm937_vm0, %v865_v42  ;;  %v815_v43 = vpop.permute.xlu1 %814  ;;  %v810_v44 = vpop.permute.xlu0 %809  ;;  %v1742_v42 = vld [vmem:[%s2930_s1 + $0x29] ss:$0 sm:$0xff] }
 0x192   : > { %1041 = vst.msk [vmem:[%s1938_s16 + $0x338] sm:$0xff] %vm937_vm0, %v815_v43  ;;  %v1743_v43 = vld [vmem:[%s2930_s1 + $0x2a] ss:$0 sm:$0xff] }
 0x193   : > { %1040 = vst.msk [vmem:[%s1938_s16 + $0x330] sm:$0xff] %vm937_vm0, %v810_v44  ;;  %v1744_v44 = vld [vmem:[%s2930_s1 + $0x2b] ss:$0 sm:$0xff] }
 0x194   : > { %1596 = vst.msk [vmem:[%s1938_s16 + $0x5b0] sm:$0xff] %vm937_vm0, %v1728_v28 }
 0x195   : > { %1597 = vst.msk [vmem:[%s1938_s16 + $0x5b8] sm:$0xff] %vm937_vm0, %v1728_v28 }
 0x196   : > { %1598 = vst.msk [vmem:[%s1938_s16 + $0x5c0] sm:$0xff] %vm937_vm0, %v1729_v29 }
 0x197   : > { %1599 = vst.msk [vmem:[%s1938_s16 + $0x5c8] sm:$0xff] %vm937_vm0, %v1729_v29 }
 0x198   : > { %v880_v45 = vpop.permute.xlu2 %879  ;;  %1600 = vst.msk [vmem:[%s1938_s16 + $0x5d0] sm:$0xff] %vm937_vm0, %v1730_v30 }
 0x199   : > { %1054 = vst.msk [vmem:[%s1938_s16 + $0x3a0] sm:$0xff] %vm937_vm0, %v880_v45  ;;  %v830_v46 = vpop.permute.xlu1 %829  ;;  %v825_v47 = vpop.permute.xlu0 %824  ;;  %v1745_v45 = vld [vmem:[%s2930_s1 + $0x2c] ss:$0 sm:$0xff] }
 0x19a   : > { %1044 = vst.msk [vmem:[%s1938_s16 + $0x350] sm:$0xff] %vm937_vm0, %v830_v46  ;;  %v1746_v46 = vld [vmem:[%s2930_s1 + $0x2d] ss:$0 sm:$0xff] }
 0x19b   : > { %1043 = vst.msk [vmem:[%s1938_s16 + $0x348] sm:$0xff] %vm937_vm0, %v825_v47  ;;  %v1747_v47 = vld [vmem:[%s2930_s1 + $0x2e] ss:$0 sm:$0xff] }
 0x19c   : > { %1601 = vst.msk [vmem:[%s1938_s16 + $0x5d8] sm:$0xff] %vm937_vm0, %v1730_v30 }
 0x19d   : > { %1602 = vst.msk [vmem:[%s1938_s16 + $0x5e0] sm:$0xff] %vm937_vm0, %v1731_v31 }
 0x19e   : > { %1603 = vst.msk [vmem:[%s1938_s16 + $0x5e8] sm:$0xff] %vm937_vm0, %v1731_v31 }
 0x19f   : > { %1604 = vst.msk [vmem:[%s1938_s16 + $0x5f0] sm:$0xff] %vm937_vm0, %v1732_v32 }
 0x1a0   : > { %v895_v48 = vpop.permute.xlu2 %894  ;;  %1605 = vst.msk [vmem:[%s1938_s16 + $0x5f8] sm:$0xff] %vm937_vm0, %v1732_v32 }
 0x1a1   : > { %1057 = vst.msk [vmem:[%s1938_s16 + $0x3b8] sm:$0xff] %vm937_vm0, %v895_v48  ;;  %v845_v49 = vpop.permute.xlu1 %844  ;;  %v840_v50 = vpop.permute.xlu0 %839  ;;  %v1748_v48 = vld [vmem:[%s2930_s1 + $0x2f] ss:$0 sm:$0xff] }
 0x1a2   : > { %1047 = vst.msk [vmem:[%s1938_s16 + $0x368] sm:$0xff] %vm937_vm0, %v845_v49  ;;  %v1749_v49 = vld [vmem:[%s2930_s1 + $0x30] ss:$0 sm:$0xff] }
 0x1a3   : > { %1046 = vst.msk [vmem:[%s1938_s16 + $0x360] sm:$0xff] %vm937_vm0, %v840_v50  ;;  %v1750_v50 = vld [vmem:[%s2930_s1 + $0x31] ss:$0 sm:$0xff] }
 0x1a4   : > { %1606 = vst.msk [vmem:[%s1938_s16 + $0x600] sm:$0xff] %vm937_vm0, %v1733_v33 }
 0x1a5   : > { %1607 = vst.msk [vmem:[%s1938_s16 + $0x608] sm:$0xff] %vm937_vm0, %v1733_v33 }
 0x1a6   : > { %1608 = vst.msk [vmem:[%s1938_s16 + $0x610] sm:$0xff] %vm937_vm0, %v1734_v34 }
 0x1a7   : > { %1609 = vst.msk [vmem:[%s1938_s16 + $0x618] sm:$0xff] %vm937_vm0, %v1734_v34 }
 0x1a8   : > { %v910_v51 = vpop.permute.xlu2 %909  ;;  %1610 = vst.msk [vmem:[%s1938_s16 + $0x620] sm:$0xff] %vm937_vm0, %v1735_v35 }
 0x1a9   : > { %1060 = vst.msk [vmem:[%s1938_s16 + $0x3d0] sm:$0xff] %vm937_vm0, %v910_v51  ;;  %v860_v52 = vpop.permute.xlu1 %859  ;;  %v855_v53 = vpop.permute.xlu0 %854  ;;  %v1751_v51 = vld [vmem:[%s2930_s1 + $0x32] ss:$0 sm:$0xff] }
 0x1aa   : > { %1050 = vst.msk [vmem:[%s1938_s16 + $0x380] sm:$0xff] %vm937_vm0, %v860_v52  ;;  %v1752_v52 = vld [vmem:[%s2930_s1 + $0x33] ss:$0 sm:$0xff] }
 0x1ab   : > { %1049 = vst.msk [vmem:[%s1938_s16 + $0x378] sm:$0xff] %vm937_vm0, %v855_v53  ;;  %v1753_v53 = vld [vmem:[%s2930_s1 + $0x34] ss:$0 sm:$0xff] }
 0x1ac   : > { %1611 = vst.msk [vmem:[%s1938_s16 + $0x628] sm:$0xff] %vm937_vm0, %v1735_v35 }
 0x1ad   : > { %1612 = vst.msk [vmem:[%s1938_s16 + $0x630] sm:$0xff] %vm937_vm0, %v1736_v36 }
 0x1ae   : > { %1613 = vst.msk [vmem:[%s1938_s16 + $0x638] sm:$0xff] %vm937_vm0, %v1736_v36 }
 0x1af   : > { %1614 = vst.msk [vmem:[%s1938_s16 + $0x640] sm:$0xff] %vm937_vm0, %v1737_v37 }
 0x1b0   : > { %v925_v54 = vpop.permute.xlu2 %924  ;;  %1615 = vst.msk [vmem:[%s1938_s16 + $0x648] sm:$0xff] %vm937_vm0, %v1737_v37 }
 0x1b1   : > { %1063 = vst.msk [vmem:[%s1938_s16 + $0x3e8] sm:$0xff] %vm937_vm0, %v925_v54  ;;  %v875_v55 = vpop.permute.xlu1 %874  ;;  %v870_v56 = vpop.permute.xlu0 %869  ;;  %v1754_v54 = vld [vmem:[%s2930_s1 + $0x35] ss:$0 sm:$0xff] }
 0x1b2   : > { %1053 = vst.msk [vmem:[%s1938_s16 + $0x398] sm:$0xff] %vm937_vm0, %v875_v55  ;;  %v1755_v55 = vld [vmem:[%s2930_s1 + $0x36] ss:$0 sm:$0xff] }
 0x1b3   : > { %1052 = vst.msk [vmem:[%s1938_s16 + $0x390] sm:$0xff] %vm937_vm0, %v870_v56  ;;  %v1756_v56 = vld [vmem:[%s2930_s1 + $0x37] ss:$0 sm:$0xff] }
 0x1b4   : > { %1616 = vst.msk [vmem:[%s1938_s16 + $0x650] sm:$0xff] %vm937_vm0, %v1738_v38 }
 0x1b5   : > { %1617 = vst.msk [vmem:[%s1938_s16 + $0x658] sm:$0xff] %vm937_vm0, %v1738_v38 }
 0x1b6   : > { %1618 = vst.msk [vmem:[%s1938_s16 + $0x660] sm:$0xff] %vm937_vm0, %v1739_v39 }
 0x1b7   : > { %1619 = vst.msk [vmem:[%s1938_s16 + $0x668] sm:$0xff] %vm937_vm0, %v1739_v39 }
 0x1b8   : > { %1620 = vst.msk [vmem:[%s1938_s16 + $0x670] sm:$0xff] %vm937_vm0, %v1740_v40 }
 0x1b9   : > { %v890_v57 = vpop.permute.xlu1 %889  ;;  %v885_v58 = vpop.permute.xlu0 %884  ;;  %1621 = vst.msk [vmem:[%s1938_s16 + $0x678] sm:$0xff] %vm937_vm0, %v1740_v40 }
 0x1ba   : > { %1056 = vst.msk [vmem:[%s1938_s16 + $0x3b0] sm:$0xff] %vm937_vm0, %v890_v57  ;;  %v1757_v57 = vld [vmem:[%s2930_s1 + $0x38] ss:$0 sm:$0xff] }
 0x1bb   : > { %1055 = vst.msk [vmem:[%s1938_s16 + $0x3a8] sm:$0xff] %vm937_vm0, %v885_v58  ;;  %v1758_v58 = vld [vmem:[%s2930_s1 + $0x39] ss:$0 sm:$0xff] }
 0x1bc   : > { %1622 = vst.msk [vmem:[%s1938_s16 + $0x680] sm:$0xff] %vm937_vm0, %v1741_v41 }
 0x1bd   : > { %1623 = vst.msk [vmem:[%s1938_s16 + $0x688] sm:$0xff] %vm937_vm0, %v1741_v41 }
 0x1be   : > { %1624 = vst.msk [vmem:[%s1938_s16 + $0x690] sm:$0xff] %vm937_vm0, %v1742_v42 }
 0x1bf   : > { %1625 = vst.msk [vmem:[%s1938_s16 + $0x698] sm:$0xff] %vm937_vm0, %v1742_v42 }
 0x1c0   : > { %1626 = vst.msk [vmem:[%s1938_s16 + $0x6a0] sm:$0xff] %vm937_vm0, %v1743_v43 }
 0x1c1   : > { %v905_v59 = vpop.permute.xlu1 %904  ;;  %v900_v60 = vpop.permute.xlu0 %899  ;;  %1627 = vst.msk [vmem:[%s1938_s16 + $0x6a8] sm:$0xff] %vm937_vm0, %v1743_v43 }
 0x1c2   : > { %1059 = vst.msk [vmem:[%s1938_s16 + $0x3c8] sm:$0xff] %vm937_vm0, %v905_v59  ;;  %v1759_v59 = vld [vmem:[%s2930_s1 + $0x3a] ss:$0 sm:$0xff] }
 0x1c3   : > { %1058 = vst.msk [vmem:[%s1938_s16 + $0x3c0] sm:$0xff] %vm937_vm0, %v900_v60  ;;  %v1760_v60 = vld [vmem:[%s2930_s1 + $0x3b] ss:$0 sm:$0xff] }
 0x1c4   : > { %1628 = vst.msk [vmem:[%s1938_s16 + $0x6b0] sm:$0xff] %vm937_vm0, %v1744_v44 }
 0x1c5   : > { %1629 = vst.msk [vmem:[%s1938_s16 + $0x6b8] sm:$0xff] %vm937_vm0, %v1744_v44 }
 0x1c6   : > { %1630 = vst.msk [vmem:[%s1938_s16 + $0x6c0] sm:$0xff] %vm937_vm0, %v1745_v45 }
 0x1c7   : > { %1631 = vst.msk [vmem:[%s1938_s16 + $0x6c8] sm:$0xff] %vm937_vm0, %v1745_v45 }
 0x1c8   : > { %1632 = vst.msk [vmem:[%s1938_s16 + $0x6d0] sm:$0xff] %vm937_vm0, %v1746_v46 }
 0x1c9   : > { %v920_v63 = vpop.permute.xlu1 %919  ;;  %v915_v0 = vpop.permute.xlu0 %914  ;;  %1633 = vst.msk [vmem:[%s1938_s16 + $0x6d8] sm:$0xff] %vm937_vm0, %v1746_v46 }
 0x1ca   : > { %1062 = vst.msk [vmem:[%s1938_s16 + $0x3e0] sm:$0xff] %vm937_vm0, %v920_v63  ;;  %v1763_v63 = vld [vmem:[%s2930_s1 + $0x3e] ss:$0 sm:$0xff] }
 0x1cb   : > { %1061 = vst.msk [vmem:[%s1938_s16 + $0x3d8] sm:$0xff] %vm937_vm0, %v915_v0  ;;  %v1764_v0 = vld [vmem:[%s2930_s1 + $0x3f] ss:$0 sm:$0xff] }
 0x1cc   : > { %1634 = vst.msk [vmem:[%s1938_s16 + $0x6e0] sm:$0xff] %vm937_vm0, %v1747_v47 }
 0x1cd   : > { %1635 = vst.msk [vmem:[%s1938_s16 + $0x6e8] sm:$0xff] %vm937_vm0, %v1747_v47 }
 0x1ce   : > { %1636 = vst.msk [vmem:[%s1938_s16 + $0x6f0] sm:$0xff] %vm937_vm0, %v1748_v48 }
 0x1cf   : > { %1637 = vst.msk [vmem:[%s1938_s16 + $0x6f8] sm:$0xff] %vm937_vm0, %v1748_v48 }
 0x1d0   : > { %1638 = vst.msk [vmem:[%s1938_s16 + $0x700] sm:$0xff] %vm937_vm0, %v1749_v49 }
 0x1d1   : > { %v935_v4 = vpop.permute.xlu1 %934  ;;  %v930_v5 = vpop.permute.xlu0 %929  ;;  %1639 = vst.msk [vmem:[%s1938_s16 + $0x708] sm:$0xff] %vm937_vm0, %v1749_v49 }
 0x1d2   : > { %1065 = vst.msk [vmem:[%s1938_s16 + $0x3f8] sm:$0xff] %vm937_vm0, %v935_v4 }
 0x1d3   : > { %1064 = vst.msk [vmem:[%s1938_s16 + $0x3f0] sm:$0xff] %vm937_vm0, %v930_v5 }
 0x1d4   : > { %1640 = vst.msk [vmem:[%s1938_s16 + $0x710] sm:$0xff] %vm937_vm0, %v1750_v50 }
 0x1d5   : > { %1641 = vst.msk [vmem:[%s1938_s16 + $0x718] sm:$0xff] %vm937_vm0, %v1750_v50 }
 0x1d6   : > { %1642 = vst.msk [vmem:[%s1938_s16 + $0x720] sm:$0xff] %vm937_vm0, %v1751_v51 }
 0x1d7   : > { %1643 = vst.msk [vmem:[%s1938_s16 + $0x728] sm:$0xff] %vm937_vm0, %v1751_v51 }
 0x1d8   : > { %1644 = vst.msk [vmem:[%s1938_s16 + $0x730] sm:$0xff] %vm937_vm0, %v1752_v52 }
 0x1d9   : > { %1645 = vst.msk [vmem:[%s1938_s16 + $0x738] sm:$0xff] %vm937_vm0, %v1752_v52 }
 0x1da   : > { %1646 = vst.msk [vmem:[%s1938_s16 + $0x740] sm:$0xff] %vm937_vm0, %v1753_v53 }
 0x1db   : > { %1647 = vst.msk [vmem:[%s1938_s16 + $0x748] sm:$0xff] %vm937_vm0, %v1753_v53 }
 0x1dc   : > { %1648 = vst.msk [vmem:[%s1938_s16 + $0x750] sm:$0xff] %vm937_vm0, %v1754_v54 }
 0x1dd   : > { %1649 = vst.msk [vmem:[%s1938_s16 + $0x758] sm:$0xff] %vm937_vm0, %v1754_v54 }
 0x1de   : > { %1650 = vst.msk [vmem:[%s1938_s16 + $0x760] sm:$0xff] %vm937_vm0, %v1755_v55 }
 0x1df   : > { %1651 = vst.msk [vmem:[%s1938_s16 + $0x768] sm:$0xff] %vm937_vm0, %v1755_v55 }
 0x1e0   : > { %1652 = vst.msk [vmem:[%s1938_s16 + $0x770] sm:$0xff] %vm937_vm0, %v1756_v56 }
 0x1e1   : > { %1653 = vst.msk [vmem:[%s1938_s16 + $0x778] sm:$0xff] %vm937_vm0, %v1756_v56 }
 0x1e2   : > { %1654 = vst.msk [vmem:[%s1938_s16 + $0x780] sm:$0xff] %vm937_vm0, %v1757_v57 }
 0x1e3   : > { %1655 = vst.msk [vmem:[%s1938_s16 + $0x788] sm:$0xff] %vm937_vm0, %v1757_v57 }
 0x1e4   : > { %1656 = vst.msk [vmem:[%s1938_s16 + $0x790] sm:$0xff] %vm937_vm0, %v1758_v58 }
 0x1e5   : > { %1657 = vst.msk [vmem:[%s1938_s16 + $0x798] sm:$0xff] %vm937_vm0, %v1758_v58 }
 0x1e6   : > { %1658 = vst.msk [vmem:[%s1938_s16 + $0x7a0] sm:$0xff] %vm937_vm0, %v1759_v59 }
 0x1e7   : > { %1659 = vst.msk [vmem:[%s1938_s16 + $0x7a8] sm:$0xff] %vm937_vm0, %v1759_v59 }
 0x1e8   : > { %1660 = vst.msk [vmem:[%s1938_s16 + $0x7b0] sm:$0xff] %vm937_vm0, %v1760_v60 }
 0x1e9   : > { %1661 = vst.msk [vmem:[%s1938_s16 + $0x7b8] sm:$0xff] %vm937_vm0, %v1760_v60 }
 0x1ea   : > { %1663 = vst.msk [vmem:[%s1938_s16 + $0x7c8] sm:$0xff] %vm937_vm0, %v1761_v61 }
 0x1eb   : > { %1664 = vst.msk [vmem:[%s1938_s16 + $0x7d0] sm:$0xff] %vm937_vm0, %v1762_v62 }
 0x1ec   : > { %1665 = vst.msk [vmem:[%s1938_s16 + $0x7d8] sm:$0xff] %vm937_vm0, %v1762_v62 }
 0x1ed   : > { %1666 = vst.msk [vmem:[%s1938_s16 + $0x7e0] sm:$0xff] %vm937_vm0, %v1763_v63 }
 0x1ee   : > { %1667 = vst.msk [vmem:[%s1938_s16 + $0x7e8] sm:$0xff] %vm937_vm0, %v1763_v63 }
 0x1ef   : > { %1668 = vst.msk [vmem:[%s1938_s16 + $0x7f0] sm:$0xff] %vm937_vm0, %v1764_v0 }
 0x1f0   : > { %1669 = vst.msk [vmem:[%s1938_s16 + $0x7f8] sm:$0xff] %vm937_vm0, %v1764_v0 }
 0x1f1 PF: > { %s12_s11 = sadd.s32 1, %s1787_s11   ;;  %s2932_s9 = smov %s1783_s10 }
 0x1f2   : > { %p9_p5 = scmp.ge.s32.totalorder %s12_s11, 4   ;;  %s2933_s10 = smov %s2935_s12 }
 0x1f4   :  { %11 = sbr.rel (!%p9_p5) target bundleno = 2 (0x2), region = 59 }

</bundles_post_ra>
